<compile_context>
chip_gen: v5e
topology: v5e:2x2
jax: 0.10.0
libtpu: 0.0.40
codegen_flags: <defaults>
</compile_context>

<pallas_src>
import functools

import jax
import jax.numpy as jnp
import numpy as np
from jax import lax
from jax.experimental import pallas as pl
from jax.experimental.pallas import tpu as pltpu


def _round_up(x, m):
    return (x + m - 1) // m * m


# ---------------------------------------------------------------------------
# Pass 1 (the only Pallas pass): per-phase transposed-conv matmul + packed
# per-tile BN partial statistics.
# ---------------------------------------------------------------------------
def _deconv_stats_kernel(xcol_ref, w_ref, y_ref, part_ref, *, co_p, lanes=128):
    x = xcol_ref[0]                      # (ckk_p, TM)  bf16, M lane-dense
    wm = w_ref[0]                        # (co_p, ckk_p) bf16 (this phase's taps)

    # One MXU matmul per grid step, f32 accumulation.
    y = jnp.dot(wm, x, preferred_element_type=jnp.float32)   # (co_p, TM) f32

    # Pre-BN activations stored once, in bf16 (halves the y round-trip bytes).
    y_ref[0] = y.astype(y_ref.dtype)

    # Packed BN partials: per-lane partial sums / sums-of-squares, accumulated in
    # f32 from the f32 accumulator.  Aligned 128-lane slices -> pure VPU adds.
    tm = y.shape[1]
    s_lanes = jnp.zeros((co_p, lanes), jnp.float32)
    q_lanes = jnp.zeros((co_p, lanes), jnp.float32)
    for c in range(tm // lanes):
        blk = y[:, c * lanes:(c + 1) * lanes]
        s_lanes = s_lanes + blk
        q_lanes = q_lanes + blk * blk
    part_ref[0] = jnp.concatenate([s_lanes, q_lanes], axis=0)   # (2*co_p, 128)


def deconv2d_bn_relu(x, w, b, gamma, beta, *, stride, padding, eps=1e-5,
                     tile_m=1024):
    """x: (N, Cin, H, W) NCHW; w: (Cin, Cout, K, K) (ConvTranspose2d layout)."""
    del b  # ConvTranspose2d bias is cancelled exactly by train-mode BN mean.
    n, ci, h, w_in = x.shape
    ci_w, co, k, k2 = w.shape
    assert ci_w == ci and k2 == k
    s, p = stride, padding
    ho = (h - 1) * s - 2 * p + k
    wo = (w_in - 1) * s - 2 * p + k

    # Per-phase (sub-pixel) geometry: oh = s*oh' + po, ih = oh' + dh(kh, po).
    hoq = -(-ho // s)                    # padded phase grid (ceil)
    woq = -(-wo // s)
    mq = n * hoq * woq                   # per-phase M (same for every phase)

    taps_h = [[(kh, (po + p - kh) // s) for kh in range(k)
               if (po + p - kh) % s == 0] for po in range(s)]
    taps_w = [[(kw, (pw + p - kw) // s) for kw in range(k)
               if (pw + p - kw) % s == 0] for pw in range(s)]

    all_dh = [d for tl in taps_h for (_, d) in tl]
    all_dw = [d for tl in taps_w for (_, d) in tl]
    pad_t = max(0, -min(all_dh)) if all_dh else 0
    pad_b = max(0, (max(all_dh) if all_dh else 0) + hoq - h)
    pad_l = max(0, -min(all_dw)) if all_dw else 0
    pad_r = max(0, (max(all_dw) if all_dw else 0) + woq - w_in)

    max_taps = max(len(th) * len(tw) for th in taps_h for tw in taps_w)
    ckk_p = _round_up(max(max_taps * ci, 1), 16)   # bf16 sublane-packed contraction
    co_p = _round_up(co, 8)

    # Tile sizing: big lane-dense tiles, clamped to the per-phase M so the grid
    # keeps >= s*s parallel steps (v7x megacore gets work on both cores).
    tile_m = _round_up(min(tile_m, _round_up(mq, 512)), 128)
    mq_p = _round_up(mq, tile_m)
    m_tiles = mq_p // tile_m
    n_phases = s * s

    # ---- wrapper glue (tiny, all bf16, already lane-dense / "pre-transposed") --
    xp = jnp.pad(x.astype(jnp.bfloat16),
                 ((0, 0), (0, 0), (pad_t, pad_b), (pad_l, pad_r)))

    cols, wmats = [], []
    for po in range(s):
        nvh = (-(-(ho - po) // s)) if ho > po else 0   # valid output rows of phase
        for pw in range(s):
            nvw = (-(-(wo - pw) // s)) if wo > pw else 0
            taps = [(kh, dh, kw, dw)
                    for (kh, dh) in taps_h[po] for (kw, dw) in taps_w[pw]]
            slabs, wrows = [], []
            for (kh, dh, kw, dw) in taps:
                win = xp[:, :, pad_t + dh:pad_t + dh + nvh,
                         pad_l + dw:pad_l + dw + nvw]          # (N, Cin, nvh, nvw)
                # zero-pad the sliced-off phase rows/cols so they contribute 0 to
                # the BN statistics (and to the padded output region).
                win = jnp.pad(win, ((0, 0), (0, 0),
                                    (0, hoq - nvh), (0, woq - nvw)))
                slabs.append(jnp.transpose(win, (1, 0, 2, 3)))  # (Cin, N, Hq, Wq)
                # direct (un-flipped) transposed-conv weights: w[ci, co, kh, kw]
                wrows.append(jnp.transpose(w[:, :, kh, kw], (1, 0)))  # (Co, Cin)
            if taps:
                col = jnp.stack(slabs, axis=0).reshape(len(taps) * ci, mq)
                wrow = jnp.concatenate(wrows, axis=1)           # (Co, T*Cin)
            else:
                col = jnp.zeros((1, mq), jnp.bfloat16)
                wrow = jnp.zeros((co, 1), jnp.float32)
            col = jnp.pad(col, ((0, ckk_p - col.shape[0]), (0, mq_p - mq)))
            wrow = jnp.pad(wrow.astype(jnp.float32),
                           ((0, co_p - co), (0, ckk_p - wrow.shape[1])))
            cols.append(col)
            wmats.append(wrow)

    xcol_all = jnp.stack(cols, axis=0)                          # (s*s, ckk_p, mq_p) bf16
    w_all = jnp.stack(wmats, axis=0).astype(jnp.bfloat16)       # (s*s, co_p, ckk_p)

    cparams = pltpu.CompilerParams(
        dimension_semantics=("parallel", "parallel"),   # phases x M-tiles
        vmem_limit_bytes=32 * 1024 * 1024)              # tiny tiles; safe on v7x 64MiB

    y_pre, partials = pl.pallas_call(
        functools.partial(_deconv_stats_kernel, co_p=co_p),
        out_shape=(
            jax.ShapeDtypeStruct((n_phases, co_p, mq_p), jnp.bfloat16),
            jax.ShapeDtypeStruct((n_phases, 2 * co_p, m_tiles * 128), jnp.float32),
        ),
        grid=(n_phases, m_tiles),
        in_specs=[
            pl.BlockSpec((1, ckk_p, tile_m), lambda ph, i: (ph, 0, i)),
            pl.BlockSpec((1, co_p, ckk_p), lambda ph, i: (ph, 0, 0)),
        ],
        out_specs=(
            pl.BlockSpec((1, co_p, tile_m), lambda ph, i: (ph, 0, i)),
            pl.BlockSpec((1, 2 * co_p, 128), lambda ph, i: (ph, 0, i)),
        ),
        compiler_params=cparams,
    )(xcol_all, w_all)

    # ---- tiny XLA glue: combine packed partials, fold BN into scale/shift ------
    count = float(n * ho * wo)                 # padded phase positions are exact 0s
    sums = jnp.sum(partials[:, :co_p, :], axis=(0, 2))[:co]
    sqs = jnp.sum(partials[:, co_p:, :], axis=(0, 2))[:co]
    mean = sums / count
    var = jnp.maximum(sqs / count - mean * mean, 0.0)   # biased var (PyTorch norm)
    inv_std = lax.rsqrt(var + eps)
    scale = gamma.astype(jnp.float32) * inv_std
    shift = beta.astype(jnp.float32) - mean * scale

    # ---- single fused XLA epilogue: affine + ReLU + phase interleave + crop ----
    # (review item 3: pass 2 dropped; the output is read/written exactly once here)
    y = y_pre[:, :co, :mq].astype(jnp.float32).reshape(s, s, co, n, hoq, woq)
    y = y * scale.reshape(1, 1, co, 1, 1, 1) + shift.reshape(1, 1, co, 1, 1, 1)
    y = jnp.maximum(y, 0.0)
    y = jnp.transpose(y, (3, 2, 4, 0, 5, 1))            # (N, Co, Hq, s, Wq, s)
    out = y.reshape(n, co, hoq * s, woq * s)[:, :, :ho, :wo]
    return out


def _reference(x, w, b, gamma, beta, *, stride, padding, eps=1e-5):
    """Pure-JAX reference: PyTorch ConvTranspose2d + train-mode BN + ReLU."""
    ci, co, k, _ = w.shape
    w_conv = jnp.transpose(w[:, :, ::-1, ::-1], (1, 0, 2, 3))  # (Cout, Cin, K, K)
    pad = k - 1 - padding
    y = lax.conv_general_dilated(
        x.astype(jnp.float32), w_conv.astype(jnp.float32),
        window_strides=(1, 1), padding=[(pad, pad), (pad, pad)],
        lhs_dilation=(stride, stride),
        dimension_numbers=("NCHW", "OIHW", "NCHW"))
    y = y + b.reshape(1, co, 1, 1)
    mean = jnp.mean(y, axis=(0, 2, 3), keepdims=True)
    var = jnp.mean((y - mean) ** 2, axis=(0, 2, 3), keepdims=True)
    yhat = (y - mean) * lax.rsqrt(var + eps)
    return jnp.maximum(gamma.reshape(1, co, 1, 1) * yhat + beta.reshape(1, co, 1, 1),
                       0.0)


if __name__ == "__main__":
    # Module config: deconv2DBatchNormRelu(in_channels=4, n_filters=8, k_size=3,
    #                                      stride=2, padding=1, bias=True)
    in_channels, n_filters, k_size, stride, padding = 4, 8, 3, 2, 1
    N, H, W = 2, 16, 16

    key = jax.random.PRNGKey(0)
    kx, kw, kb, kg, kbeta = jax.random.split(key, 5)
    x = jax.random.normal(kx, (N, in_channels, H, W), dtype=jnp.float32)
    w = 0.1 * jax.random.normal(kw, (in_channels, n_filters, k_size, k_size),
                                dtype=jnp.float32)
    b = 0.1 * jax.random.normal(kb, (n_filters,), dtype=jnp.float32)
    gamma = 1.0 + 0.1 * jax.random.normal(kg, (n_filters,), dtype=jnp.float32)
    beta = 0.1 * jax.random.normal(kbeta, (n_filters,), dtype=jnp.float32)

    fn = jax.jit(functools.partial(deconv2d_bn_relu, stride=stride,
                                   padding=padding))
    out = jax.block_until_ready(fn(x, w, b, gamma, beta))

    ref = _reference(x, w, b, gamma, beta, stride=stride, padding=padding)
    ho = (H - 1) * stride - 2 * padding + k_size
    wo = (W - 1) * stride - 2 * padding + k_size
    assert out.shape == ref.shape == (N, n_filters, ho, wo)
    np.testing.assert_allclose(np.asarray(out), np.asarray(ref),
                               rtol=5e-2, atol=5e-2)
    print("KERNEL_OK")
</pallas_src>

<mosaic_0001>
module attributes {stable_mosaic.version = 11 : i64} {
  func.func @_deconv_stats_kernel(%arg0: i32, %arg1: i32, %arg2: memref<1x16x512xbf16, #tpu.memory_space<vmem>>, %arg3: memref<1x8x16xbf16, #tpu.memory_space<vmem>>, %arg4: memref<1x8x512xbf16, #tpu.memory_space<vmem>>, %arg5: memref<1x16x128xf32, #tpu.memory_space<vmem>>) attributes {dimension_semantics = [#tpu.dimension_semantics<parallel>, #tpu.dimension_semantics<parallel>], iteration_bounds = array<i64: 4, 1>, scalar_prefetch = 0 : i64, scratch_operands = 0 : i64, tpu.core_type = #tpu.core_type<tc>, window_params = [{transform_indices = @transform_0, window_bounds = array<i64: 1, 16, 512>}, {transform_indices = @transform_1, window_bounds = array<i64: 1, 8, 16>}, {transform_indices = @transform_2, window_bounds = array<i64: 1, 8, 512>}, {transform_indices = @transform_3, window_bounds = array<i64: 1, 16, 128>}]} {
    %c0 = arith.constant 0 : index
    %c0_0 = arith.constant 0 : index
    %c0_1 = arith.constant 0 : index
    %0 = vector.load %arg2[%c0, %c0_0, %c0_1] : memref<1x16x512xbf16, #tpu.memory_space<vmem>>, vector<1x16x512xbf16>
    %1 = vector.shape_cast %0 : vector<1x16x512xbf16> to vector<16x512xbf16>
    %c0_2 = arith.constant 0 : index
    %c0_3 = arith.constant 0 : index
    %c0_4 = arith.constant 0 : index
    %2 = vector.load %arg3[%c0_2, %c0_3, %c0_4] : memref<1x8x16xbf16, #tpu.memory_space<vmem>>, vector<1x8x16xbf16>
    %3 = vector.shape_cast %2 : vector<1x8x16xbf16> to vector<8x16xbf16>
    %cst = arith.constant dense<0.000000e+00> : vector<8x512xf32>
    %4 = tpu.matmul %3, %1, %cst {dimension_numbers = #tpu.dot_dimension_numbers<[1], [0], [0], [1], [0, 0, 1, 1], [], []>} : vector<8x16xbf16>, vector<16x512xbf16>, vector<8x512xf32> -> vector<8x512xf32>
    %5 = arith.truncf %4 : vector<8x512xf32> to vector<8x512xbf16>
    %c0_5 = arith.constant 0 : index
    %c0_6 = arith.constant 0 : index
    %c0_7 = arith.constant 0 : index
    %6 = vector.load %arg4[%c0_5, %c0_6, %c0_7] : memref<1x8x512xbf16, #tpu.memory_space<vmem>>, vector<1x8x512xbf16>
    %7 = vector.shape_cast %6 : vector<1x8x512xbf16> to vector<8x512xbf16>
    %8 = vector.shape_cast %5 : vector<8x512xbf16> to vector<1x8x512xbf16>
    tpu.vector_store %arg4[%c0_5, %c0_6, %c0_7], %8 {strides = array<i32>} : memref<1x8x512xbf16, #tpu.memory_space<vmem>>, vector<1x8x512xbf16>,
    %cst_8 = arith.constant 0.000000e+00 : f32
    %9 = vector.broadcast %cst_8 : f32 to vector<8x128xf32>
    %cst_9 = arith.constant 0.000000e+00 : f32
    %10 = vector.broadcast %cst_9 : f32 to vector<8x128xf32>
    %11 = vector.extract_strided_slice %4 {offsets = [0, 0], sizes = [8, 128], strides = [1, 1]} : vector<8x512xf32> to vector<8x128xf32>
    %12 = arith.addf %9, %11 : vector<8x128xf32>
    %13 = arith.mulf %11, %11 : vector<8x128xf32>
    %14 = arith.addf %10, %13 : vector<8x128xf32>
    %15 = vector.extract_strided_slice %4 {offsets = [0, 128], sizes = [8, 128], strides = [1, 1]} : vector<8x512xf32> to vector<8x128xf32>
    %16 = arith.addf %12, %15 : vector<8x128xf32>
    %17 = arith.mulf %15, %15 : vector<8x128xf32>
    %18 = arith.addf %14, %17 : vector<8x128xf32>
    %19 = vector.extract_strided_slice %4 {offsets = [0, 256], sizes = [8, 128], strides = [1, 1]} : vector<8x512xf32> to vector<8x128xf32>
    %20 = arith.addf %16, %19 : vector<8x128xf32>
    %21 = arith.mulf %19, %19 : vector<8x128xf32>
    %22 = arith.addf %18, %21 : vector<8x128xf32>
    %23 = vector.extract_strided_slice %4 {offsets = [0, 384], sizes = [8, 128], strides = [1, 1]} : vector<8x512xf32> to vector<8x128xf32>
    %24 = arith.addf %20, %23 : vector<8x128xf32>
    %25 = arith.mulf %23, %23 : vector<8x128xf32>
    %26 = arith.addf %22, %25 : vector<8x128xf32>
    %27 = tpu.concatenate %24, %26 in 0 : vector<8x128xf32>, vector<8x128xf32> -> vector<16x128xf32>
    %c0_10 = arith.constant 0 : index
    %c0_11 = arith.constant 0 : index
    %c0_12 = arith.constant 0 : index
    %28 = vector.load %arg5[%c0_10, %c0_11, %c0_12] : memref<1x16x128xf32, #tpu.memory_space<vmem>>, vector<1x16x128xf32>
    %29 = vector.shape_cast %28 : vector<1x16x128xf32> to vector<16x128xf32>
    %30 = vector.shape_cast %27 : vector<16x128xf32> to vector<1x16x128xf32>
    tpu.vector_store %arg5[%c0_10, %c0_11, %c0_12], %30 {strides = array<i32>} : memref<1x16x128xf32, #tpu.memory_space<vmem>>, vector<1x16x128xf32>,
    return
  }
  func.func @transform_0(%arg0: i32, %arg1: i32) -> (i32, i32, i32) {
    %c0_i32 = arith.constant 0 : i32
    %c0_i32_0 = arith.constant 0 : i32
    return %arg0, %c0_i32, %arg1 : i32, i32, i32
  }
  func.func @transform_1(%arg0: i32, %arg1: i32) -> (i32, i32, i32) {
    %c0_i32 = arith.constant 0 : i32
    %c0_i32_0 = arith.constant 0 : i32
    %c0_i32_1 = arith.constant 0 : i32
    return %arg0, %c0_i32, %c0_i32_0 : i32, i32, i32
  }
  func.func @transform_2(%arg0: i32, %arg1: i32) -> (i32, i32, i32) {
    %c0_i32 = arith.constant 0 : i32
    %c0_i32_0 = arith.constant 0 : i32
    return %arg0, %c0_i32, %arg1 : i32, i32, i32
  }
  func.func @transform_3(%arg0: i32, %arg1: i32) -> (i32, i32, i32) {
    %c0_i32 = arith.constant 0 : i32
    %c0_i32_0 = arith.constant 0 : i32
    return %arg0, %c0_i32, %arg1 : i32, i32, i32
  }
}

</mosaic_0001>

<bundles_post_ra>
// kernel: deconv2d_bn_relu.1
= control target key start
LH: loop header
LB: loop body
LE: loop exit
PB: predicated region body
PF: predicated region fallthrough
CT: control target
= control target key end

     0   :  { %s603_s12 = smov 0   ;;  %s605_s13 = smov 0   ;;  %s647_s0 = inlined_call_operand.vmem [shape: bf16[4,16,512], index: 0, kind: input, shape index: {}]   ;;  %s648_s1 = inlined_call_operand.vmem [shape: bf16[4,8,16], index: 1, kind: input, shape index: {}]   ;;  %s649_s2 = inlined_call_operand.vmem [shape: bf16[4,8,512], index: 2, kind: output, shape index: {0}]   ;;  %s650_s3 = inlined_call_operand.vmem [shape: f32[4,16,128], index: 3, kind: output, shape index: {1}]  }
   0x1   :  { %s607_s14 = smov 0  }
   0x2 LB: > { %s26_s15 = sadd.s32 1, %s577_s13  ;;  %p498_p0 = scmp.ge.s32.totalorder %s581_s14, 1  ;;  %s581_s14 = sphi %s607_s14, %s14_s14   ;;  %s577_s13 = sphi %s605_s13, %s652_s13   ;;  %s573_s12 = sphi %s603_s12, %s651_s12  }
   0x3   : > { %p28_p1 = scmp.ge.s32.totalorder %s26_s15, 4  ;;  %p172_p2 = scmp.lt.s32.totalorder %s581_s14, 5 }
   0x5   : > { %s654_s15 = smov (%p28_p1, %s26_s15), 0  ;;  %p173_p3 = pnand %p498_p0, %p172_p2 }
   0x6   : > { %p217_p4 = scmp.lt.s32.totalorder (!%p173_p3), %s573_s12, 3 }
   0x7   : > { %176 = sbr.rel (%p173_p3) target bundleno = 163 (0xa3), region = 28 }
   0xc   : > { %s656_s12 = smov (!%p217_p4, %s573_s12), 3  ;;  %vm274_vm0 = vcmask 130048  }
   0xd   : > { %s528_s16 = sshll.u32 %s656_s12, 5  ;;  %s501_s17 = sshll.u32 %s656_s12, 2 }
   0xe   : > { %s224_s20 = scalar_lea.vmem %s647_s0, %s528_s16  ;;  %s229_s23 = scalar_lea.vmem %s648_s1, %s501_s17 }
   0xf   : > { %v508_v0 = vld [vmem:[%s224_s20] sm:$0xf]  ;;  %v533_v1 = vld [vmem:[%s224_s20 + $0xc] sm:$0xf0]  ;;  %v531_v2 = vld [vmem:[%s224_s20 + $0x4] sm:$0xf] }
  0x10   : > { %v509_v3 = vor.u32 %v533_v1, %v508_v0  ;;  %v510_v4 = vld [vmem:[%s224_s20 + $0x10] sm:$0xf0]  ;;  %v516_v5 = vld [vmem:[%s224_s20 + $0x8] sm:$0xf]  ;;  %v534_v6 = vld [vmem:[%s224_s20 + $0x14] sm:$0xf0] }
  0x11   : > { %v513_v7 = vor.u32 %v531_v2, %v510_v4  ;;  %v517_v8 = vor.u32 %v534_v6, %v516_v5  ;;  %v532_v9 = vld [vmem:[%s224_s20 + $0xc] sm:$0xf]  ;;  %v518_v10 = vld [vmem:[%s224_s20 + $0x18] sm:$0xf0]  ;;  %v253_v12 = vld [vmem:[%s229_s23] sm:$0xf] }
  0x12   : > { %285 = vmatpush.bf16.msra.mxu0 %v509_v3  ;;  %v521_v11 = vor.u32 %v532_v9, %v518_v10  ;;  %s529_s24 = sshll.u32 %s656_s12, 4 }
  0x13   : > { %298 = vmatpush.bf16.msra.mxu1 %v513_v7  ;;  %311 = vmatpush.bf16.msra.mxu2 %v517_v8  ;;  %s238_s27 = scalar_lea.vmem %s649_s2, %s529_s24  ;;  %s247_s30 = scalar_lea.vmem %s650_s3, %s529_s24 }
  0x14   : > { %324 = vmatpush.bf16.msra.mxu3 %v521_v11 }
  0x15   : > { %522 = vmatmul.msk.bf16.vlgmr.msra.gmra.mxu0 %vm274_vm0, %v253_v12 }
  0x16   : > { %523 = vmatmul.msk.bf16.vlgmr.msra.gmra.mxu1 %vm274_vm0, %v253_v12  ;;  %524 = vmatmul.msk.bf16.vlgmr.msra.gmra.mxu2 %vm274_vm0, %v253_v12 }
  0x17   : > { %525 = vmatmul.msk.bf16.vlgmr.msra.gmra.mxu3 %vm274_vm0, %v253_v12 }
  0x92   : > { %v287_v13 = vpop.f32.mrf.mxu0 }
  0x93   : > { %v300_v14 = vpop.f32.mrf.mxu1  ;;  %v335_v15 = vmul.f32 %v287_v13, %v287_v13 }
  0x94   : > { %v330_v16 = vpack.c.bf16 %v300_v14, %v287_v13  ;;  %v338_v17 = vmul.f32 %v300_v14, %v300_v14  ;;  %v337_v18 = vadd.f32 %v300_v14, %v287_v13 }
  0x96   : > { %332 = vst [vmem:[%s238_s27] sm:$0xff] %v330_v16  ;;  %v339_v19 = vadd.f32 %v338_v17, %v335_v15 }
  0x99   : > { %v313_v20 = vpop.f32.mrf.mxu2 }
  0x9a   : > { %v340_v21 = vadd.f32 %v337_v18, %v313_v20  ;;  %v341_v22 = vmul.f32 %v313_v20, %v313_v20  ;;  %v326_v23 = vpop.f32.mrf.mxu3  ;;  %v289_v24 = vpop.f32.mrf.mxu0 }
  0x9b   : > { %v331_v25 = vpack.c.bf16 %v326_v23, %v313_v20  ;;  %v302_v26 = vpop.f32.mrf.mxu1  ;;  %v344_v29 = vmul.f32 %v326_v23, %v326_v23 }
  0x9c   : > { %v342_v27 = vadd.f32 %v341_v22, %v339_v19  ;;  %v343_v28 = vadd.f32 %v340_v21, %v326_v23 }
  0x9d   : > { %333 = vst [vmem:[%s238_s27 + $0x8] sm:$0xff] %v331_v25 }
  0x9e   : > { %v345_v30 = vadd.f32 %v344_v29, %v342_v27  ;;  %346 = vst [vmem:[%s247_s30] sm:$0xff] %v343_v28 }
  0xa0   : > { %347 = vst [vmem:[%s247_s30 + $0x8] sm:$0xff] %v345_v30 }
  0xa1   : > { %v315_v31 = vpop.f32.mrf.mxu2 }
  0xa2   : > { %v328_v32 = vpop.f32.mrf.mxu3 }
  0xa3 PF: > { %s14_s14 = sadd.s32 1, %s581_s14   ;;  %s651_s12 = smov %s577_s13 }
  0xa4   : > { %p11_p5 = scmp.ge.s32.totalorder %s14_s14, 6   ;;  %s652_s13 = smov %s654_s15 }
  0xa6   :  { %13 = sbr.rel (!%p11_p5) target bundleno = 2 (0x2), region = 73 }

</bundles_post_ra>
